<compile_context>
chip_gen: v6e
topology: v6e:2x2x1
jax: 0.10.0
libtpu: 0.0.40
codegen_flags: <defaults>
</compile_context>

<pallas_src>
import jax
import jax.numpy as jnp
from jax.experimental import pallas as pl
from jax.experimental.pallas import tpu as pltpu


def _pad_to(n, m):
    return ((n + m - 1) // m) * m


def _pack_params(params, m_dim, compute_dtype):
    """Pack the 14 PyTorch tensors into one weight slab + one bias slab.

    Every weight block is padded so all in-kernel slices are (8-row, 128/256-
    lane) aligned and all matmul LHS widths are a full 128 lanes (zero-padded
    lanes stay zero end-to-end, so no narrow-lane slicing is ever needed).
    """
    (w1, b1, w2, b2, ws, bs, wt, bt,
     wl1, bl1, wl2, bl2, wo, bo) = [jnp.asarray(p, jnp.float32) for p in params]
    M = m_dim
    C1, C2 = w1.shape[1], w2.shape[1]
    AUX = ws.shape[1]
    L1, L2 = wl1.shape[1], wl2.shape[1]
    AUXP = 128                      # sigmoid / tanh halves on 128-lane groups
    LANE = 2 * AUXP
    assert max(M, C2, AUX, L1) <= 128 and L2 + 1 <= 128, "dims exceed one lane group"

    # Linear GCN fusion (valid because activation=None between the two graph
    # convolution layers in this module):
    #   h2 = A'^2 (x W1 W2) + rowsum(A'^2) (x) (b1 W2) + rowsum(A') (x) b2
    hp = jax.lax.Precision.HIGHEST
    W12 = jnp.dot(w1, w2, precision=hp)        # (M, C2)
    bw = jnp.dot(b1[None, :], w2, precision=hp)[0]   # (C2,)

    def blk(rows, pieces):
        out = jnp.zeros((rows, LANE), jnp.float32)
        for mat, r0, c0 in pieces:
            out = out.at[r0:r0 + mat.shape[0], c0:c0 + mat.shape[1]].set(mat)
        return out

    Mp = _pad_to(M, 8)
    blocks = [
        blk(Mp,  [(W12, 0, 0)]),                              # x @ W12
        blk(128, [(ws[:C2], 0, 0), (wt[:C2], 0, AUXP)]),      # h2 part of agg
        blk(Mp,  [(ws[C2:], 0, 0), (wt[C2:], 0, AUXP)]),      # node part of agg
        blk(128, [(wl1, 0, 0)]),                              # linear_layer[0]
        blk(128, [(wl2, 0, 0)]),                              # linear_layer[1]
        blk(128, [(wo, 0, L2)]),                              # output -> lane L2
    ]
    offs, off = [], 0
    for b_ in blocks:
        offs.append(off)
        off += b_.shape[0]
    w_slab = jnp.concatenate(blocks, axis=0).astype(compute_dtype)

    b_slab = jnp.zeros((8, LANE), jnp.float32)
    b_slab = b_slab.at[0, :C2].set(bw)                        # rowsum(A'^2) term
    b_slab = b_slab.at[1, :C2].set(b2)                        # rowsum(A')  term
    b_slab = b_slab.at[2, :AUX].set(bs)
    b_slab = b_slab.at[2, AUXP:AUXP + AUX].set(bt)
    b_slab = b_slab.at[3, :L1].set(bl1)
    b_slab = b_slab.at[4, :L2].set(bl2)
    b_slab = b_slab.at[5, L2].set(bo[0])
    return w_slab, b_slab, tuple(offs), (C2, AUX, L1, L2, AUXP)


def _make_kernel(N, M, AUXP, offs, compute_dtype):
    o12, oah, oax, ol1, ol2, oo = offs
    cd = compute_dtype
    W = 128
    LANE = 2 * AUXP

    def kernel(adj_ref, node_ref, w_ref, b_ref, out_ref):
        Bt = node_ref.shape[0]
        BN = Bt * N

        A2 = adj_ref[:, :, :N]                                 # (Bt,N,N) = (A+I)^2
        r2 = adj_ref[:, :, N:N + 1].reshape(BN, 1).astype(jnp.float32)   # rowsum(A'^2)
        r1 = adj_ref[:, :, N + 1:N + 2].reshape(BN, 1).astype(jnp.float32)  # rowsum(A')
        xf = node_ref[...].reshape(BN, M)                      # (Bt*N, M), compute dtype

        bw = b_ref[0:1, :W]
        bb2 = b_ref[1:2, :W]
        bst = b_ref[2:3, :LANE]
        bl1 = b_ref[3:4, :W]
        bl2 = b_ref[4:5, :W]
        bo = b_ref[5:6, :W]

        # Fused two-layer GCN (activation=None between layers):
        #   h2 = A'^2 (x W1 W2) + rowsum(A'^2)*(b1 W2) + rowsum(A')*b2
        lin12 = jnp.dot(xf, w_ref[o12:o12 + M, :W],
                        preferred_element_type=jnp.float32)    # (BN, 128), lanes[:C2]
        h2 = jnp.einsum('bij,bjk->bik', A2,
                        lin12.reshape(Bt, N, W).astype(cd),
                        preferred_element_type=jnp.float32)    # (Bt,N,128)
        h2f = h2.reshape(BN, W) + r2 * bw + r1 * bb2           # f32

        # GraphAggregation on cat([h2, node], -1); sigmoid columns in lanes
        # [0, AUXP), tanh columns in lanes [AUXP, 2*AUXP): vreg-aligned split.
        st = (jnp.dot(h2f.astype(cd), w_ref[oah:oah + W, :LANE],
                      preferred_element_type=jnp.float32)
              + jnp.dot(xf, w_ref[oax:oax + M, :LANE],
                        preferred_element_type=jnp.float32)
              + bst)                                           # (BN, 256)
        gate = jax.nn.sigmoid(st[:, :AUXP]) * jnp.tanh(st[:, AUXP:])  # pad lanes -> 0
        hg = jnp.tanh(jnp.sum(gate.reshape(Bt, N, AUXP), axis=1))     # (Bt, 128)

        # linear_layer (Dropout = identity in eval) + output_layer, all at a
        # lane-dense width of 128 (padded lanes stay exactly zero).
        hl = jnp.dot(hg.astype(cd), w_ref[ol1:ol1 + W, :W],
                     preferred_element_type=jnp.float32) + bl1
        hl = jnp.dot(hl.astype(cd), w_ref[ol2:ol2 + W, :W],
                     preferred_element_type=jnp.float32) + bl2         # lanes[:L2] = h
        ov = jnp.dot(hl.astype(cd), w_ref[oo:oo + W, :W],
                     preferred_element_type=jnp.float32) + bo          # lane L2 = logit
        out_ref[...] = hl + ov                                 # single (Bt,128) store

    return kernel


def discriminator_forward(adj_in, node, params, *, batch_tile=None,
                          compute_dtype=jnp.bfloat16):
    """adj_in: (B, N, N, b_dim) float32; node: (B, N, m_dim) float32.

    Returns (output, h) exactly like the PyTorch module (hidden=None path).
    """
    adj_in = jnp.asarray(adj_in, jnp.float32)
    node = jnp.asarray(node, jnp.float32)
    B, N, _, _b_dim = adj_in.shape
    M = node.shape[-1]

    w_slab, b_slab, offs, (C2, AUX, L1, L2, AUXP) = _pack_params(
        params, M, compute_dtype)

    # glue: adj[..., 1:].permute(0,3,1,2), edge-sum factoring (exact), residual
    # folded into A' = A + I, and the linear-GCN fusion precomputes A'^2 plus
    # the two row-sums (packed as 2 extra lanes of the adjacency input).
    hp = jax.lax.Precision.HIGHEST
    adj_sum = jnp.sum(adj_in[..., 1:], axis=-1)                         # (B,N,N)
    a_plus = adj_sum + jnp.eye(N, dtype=jnp.float32)
    a2 = jnp.einsum('bij,bjk->bik', a_plus, a_plus, precision=hp)       # (B,N,N)
    adj_pack = jnp.concatenate(
        [a2, jnp.sum(a2, -1, keepdims=True), jnp.sum(a_plus, -1, keepdims=True)],
        axis=-1).astype(compute_dtype)                                  # (B,N,N+2)
    node_c = node.astype(compute_dtype)

    # Batch tiling: default keeps >= 2 grid steps when B > 8 (pipelining +
    # megacore) with the tile capped at 128 graphs (fits v5e's 16 MiB scoped
    # VMEM and v7x's 64 MiB with large headroom).  Pass batch_tile to tune.
    bp8 = _pad_to(B, 8)
    if batch_tile is None:
        batch_tile = bp8 if bp8 <= 8 else min(128, bp8 // 2)
    Bt = _pad_to(min(batch_tile, bp8), 8)
    Bp = _pad_to(B, Bt)
    if Bp != B:
        adj_pack = jnp.pad(adj_pack, ((0, Bp - B), (0, 0), (0, 0)))
        node_c = jnp.pad(node_c, ((0, Bp - B), (0, 0), (0, 0)))

    kernel = _make_kernel(N, M, AUXP, offs, compute_dtype)

    grid_spec = pltpu.PrefetchScalarGridSpec(
        num_scalar_prefetch=0,
        grid=(Bp // Bt,),
        in_specs=[
            pl.BlockSpec((Bt, N, N + 2), lambda i: (i, 0, 0)),   # A'^2 | rowsums
            pl.BlockSpec((Bt, N, M), lambda i: (i, 0, 0)),       # node tile
            pl.BlockSpec(w_slab.shape, lambda i: (0, 0)),        # packed weights
            pl.BlockSpec(b_slab.shape, lambda i: (0, 0)),        # packed biases
        ],
        out_specs=pl.BlockSpec((Bt, 128), lambda i: (i, 0)),     # lane-dense slab
    )

    fused = pl.pallas_call(
        kernel,
        out_shape=jax.ShapeDtypeStruct((Bp, 128), jnp.float32),
        grid_spec=grid_spec,
        compiler_params=pltpu.CompilerParams(
            dimension_semantics=("parallel",),
            vmem_limit_bytes=32 * 1024 * 1024),
    )(adj_pack, node_c, w_slab, b_slab)

    h = fused[:B, :L2]
    out = fused[:B, L2:L2 + 1]
    return out, h


def reference_forward(adj_in, node, params):
    """Pure-JAX mirror of the PyTorch forward (eval mode, hidden=None)."""
    w1, b1, w2, b2, ws, bs, wt, bt, wl1, bl1, wl2, bl2, wo, bo = params
    adj = jnp.transpose(adj_in[:, :, :, 1:], (0, 3, 1, 2))

    def gcn_step(x, w, b):
        lin = x @ w + b
        hid = jnp.stack([lin] * adj.shape[1], 1)
        hid = jnp.einsum('bijk,bikl->bijl', adj, hid)
        return jnp.sum(hid, 1) + lin

    h = gcn_step(node, w1, b1)
    h = gcn_step(h, w2, b2)
    ann = jnp.concatenate([h, node], -1)
    i = jax.nn.sigmoid(ann @ ws + bs)
    j = jnp.tanh(ann @ wt + bt)
    h = jnp.tanh(jnp.sum(i * j, axis=1))
    h = h @ wl1 + bl1
    h = h @ wl2 + bl2
    out = h @ wo + bo
    return out, h


def init_params(key, m_dim, graph_conv_dim, aux_dim, linear_dim):
    C1, C2 = graph_conv_dim
    L1, L2 = linear_dim
    shapes = [
        (m_dim, C1), (C1,),                 # gcn linear1
        (C1, C2), (C2,),                    # gcn linear2
        (C2 + m_dim, aux_dim), (aux_dim,),  # agg sigmoid linear
        (C2 + m_dim, aux_dim), (aux_dim,),  # agg tanh linear
        (aux_dim, L1), (L1,),               # linear_layer[0]
        (L1, L2), (L2,),                    # linear_layer[1]
        (L2, 1), (1,),                      # output_layer
    ]
    keys = jax.random.split(key, len(shapes))
    return [0.1 * jax.random.normal(k, s, dtype=jnp.float32)
            for k, s in zip(keys, shapes)]


if __name__ == "__main__":
    # small, MolGAN-consistent dims (m_dim == b_dim as in QM9 MolGAN);
    # B=16 so the default tiling gives a 2-step grid (pipelining / megacore).
    B, N = 16, 8
    b_dim = 5
    m_dim = 5
    graph_conv_dim = [32, 16]
    aux_dim = 32
    linear_dim = [32, 16]

    key = jax.random.PRNGKey(0)
    k_adj, k_node, k_par = jax.random.split(key, 3)
    adj = jax.random.uniform(k_adj, (B, N, N, b_dim), dtype=jnp.float32)
    node = jax.random.uniform(k_node, (B, N, m_dim), dtype=jnp.float32)
    params = init_params(k_par, m_dim, graph_conv_dim, aux_dim, linear_dim)

    ref_out, ref_h = reference_forward(adj, node, params)

    # 1) f32 compute path: verifies the algebraic refactoring is faithful.
    out32, h32 = discriminator_forward(adj, node, params,
                                       compute_dtype=jnp.float32)
    out32 = jax.block_until_ready(out32)
    h32 = jax.block_until_ready(h32)
    assert out32.shape == (B, 1) and h32.shape == (B, linear_dim[-1])
    assert jnp.allclose(out32, ref_out, atol=1e-3, rtol=1e-3)
    assert jnp.allclose(h32, ref_h, atol=1e-3, rtol=1e-3)

    # 2) default fast path: bf16 matmul operands, f32 accumulation/elementwise.
    out16, h16 = discriminator_forward(adj, node, params)
    out16 = jax.block_until_ready(out16)
    h16 = jax.block_until_ready(h16)
    assert out16.shape == (B, 1) and h16.shape == (B, linear_dim[-1])
    assert jnp.allclose(out16, ref_out, atol=5e-2, rtol=5e-2)
    assert jnp.allclose(h16, ref_h, atol=5e-2, rtol=5e-2)

    print("KERNEL_OK")
</pallas_src>

<mosaic_0001>
module attributes {stable_mosaic.version = 11 : i64} {
  func.func @kernel(%arg0: i32, %arg1: memref<8x8x10xf32, #tpu.memory_space<vmem>>, %arg2: memref<8x8x5xf32, #tpu.memory_space<vmem>>, %arg3: memref<528x256xf32, #tpu.memory_space<vmem>>, %arg4: memref<8x256xf32, #tpu.memory_space<vmem>>, %arg5: memref<8x128xf32, #tpu.memory_space<vmem>>) attributes {dimension_semantics = [#tpu.dimension_semantics<parallel>], iteration_bounds = array<i64: 2>, scalar_prefetch = 0 : i64, scratch_operands = 0 : i64, tpu.core_type = #tpu.core_type<tc>, window_params = [{transform_indices = @transform_0, window_bounds = array<i64: 8, 8, 10>}, {transform_indices = @transform_1, window_bounds = array<i64: 8, 8, 5>}, {pipeline_mode = #tpu.pipeline_mode<synchronous>, transform_indices = @transform_2, window_bounds = array<i64: 528, 256>}, {pipeline_mode = #tpu.pipeline_mode<synchronous>, transform_indices = @transform_3, window_bounds = array<i64: 8, 256>}, {transform_indices = @transform_4, window_bounds = array<i64: 8, 128>}]} {
    %c0 = arith.constant 0 : index
    %c0_0 = arith.constant 0 : index
    %c0_1 = arith.constant 0 : index
    %0 = vector.load %arg1[%c0, %c0_0, %c0_1] : memref<8x8x10xf32, #tpu.memory_space<vmem>>, vector<8x8x8xf32>
    %c0_2 = arith.constant 0 : index
    %c0_3 = arith.constant 0 : index
    %c8 = arith.constant 8 : index
    %1 = vector.load %arg1[%c0_2, %c0_3, %c8] : memref<8x8x10xf32, #tpu.memory_space<vmem>>, vector<8x8x1xf32>
    %2 = vector.shape_cast %1 : vector<8x8x1xf32> to vector<64x1xf32>
    %c0_4 = arith.constant 0 : index
    %c0_5 = arith.constant 0 : index
    %c9 = arith.constant 9 : index
    %3 = vector.load %arg1[%c0_4, %c0_5, %c9] : memref<8x8x10xf32, #tpu.memory_space<vmem>>, vector<8x8x1xf32>
    %4 = vector.shape_cast %3 : vector<8x8x1xf32> to vector<64x1xf32>
    %c0_6 = arith.constant 0 : index
    %c0_7 = arith.constant 0 : index
    %c0_8 = arith.constant 0 : index
    %5 = vector.load %arg2[%c0_6, %c0_7, %c0_8] : memref<8x8x5xf32, #tpu.memory_space<vmem>>, vector<8x8x5xf32>
    %6 = vector.shape_cast %5 : vector<8x8x5xf32> to vector<64x5xf32>
    %c0_9 = arith.constant 0 : index
    %c0_10 = arith.constant 0 : index
    %7 = vector.load %arg4[%c0_9, %c0_10] : memref<8x256xf32, #tpu.memory_space<vmem>>, vector<1x128xf32>
    %c1 = arith.constant 1 : index
    %c0_11 = arith.constant 0 : index
    %8 = vector.load %arg4[%c1, %c0_11] : memref<8x256xf32, #tpu.memory_space<vmem>>, vector<1x128xf32>
    %c2 = arith.constant 2 : index
    %c0_12 = arith.constant 0 : index
    %9 = vector.load %arg4[%c2, %c0_12] : memref<8x256xf32, #tpu.memory_space<vmem>>, vector<1x256xf32>
    %c3 = arith.constant 3 : index
    %c0_13 = arith.constant 0 : index
    %10 = vector.load %arg4[%c3, %c0_13] : memref<8x256xf32, #tpu.memory_space<vmem>>, vector<1x128xf32>
    %c4 = arith.constant 4 : index
    %c0_14 = arith.constant 0 : index
    %11 = vector.load %arg4[%c4, %c0_14] : memref<8x256xf32, #tpu.memory_space<vmem>>, vector<1x128xf32>
    %c5 = arith.constant 5 : index
    %c0_15 = arith.constant 0 : index
    %12 = vector.load %arg4[%c5, %c0_15] : memref<8x256xf32, #tpu.memory_space<vmem>>, vector<1x128xf32>
    %c0_16 = arith.constant 0 : index
    %c0_17 = arith.constant 0 : index
    %13 = vector.load %arg3[%c0_16, %c0_17] : memref<528x256xf32, #tpu.memory_space<vmem>>, vector<5x128xf32>
    %cst = arith.constant dense<0.000000e+00> : vector<64x128xf32>
    %14 = tpu.matmul %6, %13, %cst {dimension_numbers = #tpu.dot_dimension_numbers<[1], [0], [0], [1], [0, 0, 1, 1], [], []>} : vector<64x5xf32>, vector<5x128xf32>, vector<64x128xf32> -> vector<64x128xf32>
    %15 = vector.shape_cast %14 : vector<64x128xf32> to vector<8x8x128xf32>
    "tpu.trace_start"() <{level = 10 : i32, message = "bij,bjk->bik"}> : () -> ()
    %cst_18 = arith.constant dense<0.000000e+00> : vector<8x8x128xf32>
    %16 = tpu.matmul %0, %15, %cst_18 {dimension_numbers = #tpu.dot_dimension_numbers<[2], [1], [1], [2], [0, 0, 0, 1, 1, 2], [0], [0]>} : vector<8x8x8xf32>, vector<8x8x128xf32>, vector<8x8x128xf32> -> vector<8x8x128xf32>
    "tpu.trace_stop"() : () -> ()
    %17 = vector.shape_cast %16 : vector<8x8x128xf32> to vector<64x128xf32>
    %18 = vector.broadcast %2 : vector<64x1xf32> to vector<64x128xf32>
    %19 = vector.broadcast %7 : vector<1x128xf32> to vector<64x128xf32>
    %20 = arith.mulf %18, %19 : vector<64x128xf32>
    %21 = arith.addf %17, %20 : vector<64x128xf32>
    %22 = vector.broadcast %4 : vector<64x1xf32> to vector<64x128xf32>
    %23 = vector.broadcast %8 : vector<1x128xf32> to vector<64x128xf32>
    %24 = arith.mulf %22, %23 : vector<64x128xf32>
    %25 = arith.addf %21, %24 : vector<64x128xf32>
    %c8_19 = arith.constant 8 : index
    %c0_20 = arith.constant 0 : index
    %26 = vector.load %arg3[%c8_19, %c0_20] : memref<528x256xf32, #tpu.memory_space<vmem>>, vector<128x256xf32>
    %cst_21 = arith.constant dense<0.000000e+00> : vector<64x256xf32>
    %27 = tpu.matmul %25, %26, %cst_21 {dimension_numbers = #tpu.dot_dimension_numbers<[1], [0], [0], [1], [0, 0, 1, 1], [], []>} : vector<64x128xf32>, vector<128x256xf32>, vector<64x256xf32> -> vector<64x256xf32>
    %c136 = arith.constant 136 : index
    %c0_22 = arith.constant 0 : index
    %28 = vector.load %arg3[%c136, %c0_22] : memref<528x256xf32, #tpu.memory_space<vmem>>, vector<5x256xf32>
    %cst_23 = arith.constant dense<0.000000e+00> : vector<64x256xf32>
    %29 = tpu.matmul %6, %28, %cst_23 {dimension_numbers = #tpu.dot_dimension_numbers<[1], [0], [0], [1], [0, 0, 1, 1], [], []>} : vector<64x5xf32>, vector<5x256xf32>, vector<64x256xf32> -> vector<64x256xf32>
    %30 = arith.addf %27, %29 : vector<64x256xf32>
    %31 = vector.broadcast %9 : vector<1x256xf32> to vector<64x256xf32>
    %32 = arith.addf %30, %31 : vector<64x256xf32>
    %33 = vector.extract_strided_slice %32 {offsets = [0, 0], sizes = [64, 128], strides = [1, 1]} : vector<64x256xf32> to vector<64x128xf32>
    %34 = arith.negf %33 : vector<64x128xf32>
    %35 = math.exp %34 : vector<64x128xf32>
    %cst_24 = arith.constant 1.000000e+00 : f32
    %36 = vector.broadcast %cst_24 : f32 to vector<64x128xf32>
    %37 = arith.addf %36, %35 : vector<64x128xf32>
    %38 = arith.divf %36, %37 : vector<64x128xf32>
    %39 = vector.extract_strided_slice %32 {offsets = [0, 128], sizes = [64, 128], strides = [1, 1]} : vector<64x256xf32> to vector<64x128xf32>
    %40 = math.tanh %39 : vector<64x128xf32>
    %41 = arith.mulf %38, %40 : vector<64x128xf32>
    %42 = vector.shape_cast %41 : vector<64x128xf32> to vector<8x8x128xf32>
    %cst_25 = arith.constant dense<0.000000e+00> : vector<8x128xf32>
    %43 = vector.multi_reduction <add>, %42, %cst_25 [1] : vector<8x8x128xf32> to vector<8x128xf32>
    %44 = math.tanh %43 : vector<8x128xf32>
    %c144 = arith.constant 144 : index
    %c0_26 = arith.constant 0 : index
    %45 = vector.load %arg3[%c144, %c0_26] : memref<528x256xf32, #tpu.memory_space<vmem>>, vector<128x128xf32>
    %cst_27 = arith.constant dense<0.000000e+00> : vector<8x128xf32>
    %46 = tpu.matmul %44, %45, %cst_27 {dimension_numbers = #tpu.dot_dimension_numbers<[1], [0], [0], [1], [0, 0, 1, 1], [], []>} : vector<8x128xf32>, vector<128x128xf32>, vector<8x128xf32> -> vector<8x128xf32>
    %47 = vector.broadcast %10 : vector<1x128xf32> to vector<8x128xf32>
    %48 = arith.addf %46, %47 : vector<8x128xf32>
    %c272 = arith.constant 272 : index
    %c0_28 = arith.constant 0 : index
    %49 = vector.load %arg3[%c272, %c0_28] : memref<528x256xf32, #tpu.memory_space<vmem>>, vector<128x128xf32>
    %cst_29 = arith.constant dense<0.000000e+00> : vector<8x128xf32>
    %50 = tpu.matmul %48, %49, %cst_29 {dimension_numbers = #tpu.dot_dimension_numbers<[1], [0], [0], [1], [0, 0, 1, 1], [], []>} : vector<8x128xf32>, vector<128x128xf32>, vector<8x128xf32> -> vector<8x128xf32>
    %51 = vector.broadcast %11 : vector<1x128xf32> to vector<8x128xf32>
    %52 = arith.addf %50, %51 : vector<8x128xf32>
    %c400 = arith.constant 400 : index
    %c0_30 = arith.constant 0 : index
    %53 = vector.load %arg3[%c400, %c0_30] : memref<528x256xf32, #tpu.memory_space<vmem>>, vector<128x128xf32>
    %cst_31 = arith.constant dense<0.000000e+00> : vector<8x128xf32>
    %54 = tpu.matmul %52, %53, %cst_31 {dimension_numbers = #tpu.dot_dimension_numbers<[1], [0], [0], [1], [0, 0, 1, 1], [], []>} : vector<8x128xf32>, vector<128x128xf32>, vector<8x128xf32> -> vector<8x128xf32>
    %55 = vector.broadcast %12 : vector<1x128xf32> to vector<8x128xf32>
    %56 = arith.addf %54, %55 : vector<8x128xf32>
    %57 = arith.addf %52, %56 : vector<8x128xf32>
    %c0_32 = arith.constant 0 : index
    %c0_33 = arith.constant 0 : index
    %58 = vector.load %arg5[%c0_32, %c0_33] : memref<8x128xf32, #tpu.memory_space<vmem>>, vector<8x128xf32>
    tpu.vector_store %arg5[%c0_32, %c0_33], %57 {strides = array<i32>} : memref<8x128xf32, #tpu.memory_space<vmem>>, vector<8x128xf32>,
    return
  }
  func.func @transform_0(%arg0: i32) -> (i32, i32, i32) {
    %c0_i32 = arith.constant 0 : i32
    %c0_i32_0 = arith.constant 0 : i32
    %c0_i32_1 = arith.constant 0 : i32
    return %arg0, %c0_i32, %c0_i32_0 : i32, i32, i32
  }
  func.func @transform_1(%arg0: i32) -> (i32, i32, i32) {
    %c0_i32 = arith.constant 0 : i32
    %c0_i32_0 = arith.constant 0 : i32
    %c0_i32_1 = arith.constant 0 : i32
    return %arg0, %c0_i32, %c0_i32_0 : i32, i32, i32
  }
  func.func @transform_2(%arg0: i32) -> (i32, i32) {
    %c0_i32 = arith.constant 0 : i32
    %c0_i32_0 = arith.constant 0 : i32
    %c0_i32_1 = arith.constant 0 : i32
    return %c0_i32, %c0_i32_0 : i32, i32
  }
  func.func @transform_3(%arg0: i32) -> (i32, i32) {
    %c0_i32 = arith.constant 0 : i32
    %c0_i32_0 = arith.constant 0 : i32
    %c0_i32_1 = arith.constant 0 : i32
    return %c0_i32, %c0_i32_0 : i32, i32
  }
  func.func @transform_4(%arg0: i32) -> (i32, i32) {
    %c0_i32 = arith.constant 0 : i32
    %c0_i32_0 = arith.constant 0 : i32
    return %arg0, %c0_i32 : i32, i32
  }
}

</mosaic_0001>

<bundles_post_ra>
// kernel: tpu_custom_call.1
= control target key start
LH: loop header
LB: loop body
LE: loop exit
PB: predicated region body
PF: predicated region fallthrough
CT: control target
= control target key end

     0   :  { %9 = vsyncpa [#allocation3], 0  ;;  %s2731_s0 = inlined_call_operand.vmem [shape: f32[16,8,10], index: 0, kind: input, shape index: {}]   ;;  %s2732_s1 = inlined_call_operand.vmem [shape: f32[16,8,5], index: 1, kind: input, shape index: {}]   ;;  %s2733_s2 = inlined_call_operand.hbm [shape: f32[528,256], index: 2, kind: input, shape index: {}]   ;;  %s2734_s3 = inlined_call_operand.vmem [shape: f32[8,256], index: 3, kind: input, shape index: {}]   ;;  %s2735_s4 = inlined_call_operand.hbm [shape: f32[16,128], index: 4, kind: output, shape index: {}]  }
   0x1   :  { %10 = vsyncpa [#allocation4], 0 }
   0x2   :  { %12 = vsyncpa [#allocation4 + $0x1], 0  ;;  %s2403_s15 = smov 0   ;;  %s2405_s16 = smov 0  }
   0x3   :  { %s2407_s17 = smov 0   ;;  %s2409_s18 = smov 0  }
   0x4 LB: > { %s2424_s19 = sadd.s32 4294967295, %s2368_s18   ;;  %s1867_s20 = sadd.s32 4294967294, %s2368_s18   ;;  %s2368_s18 = sphi %s2409_s18, %s2743_s18   ;;  %s2364_s17 = sphi %s2407_s17, %s2742_s17   ;;  %s2360_s16 = sphi %s2405_s16, %s2741_s16   ;;  %s2356_s15 = sphi %s2403_s15, %s2740_s15  }
   0x5   : > { %s2428_s21 = sadd.s32 1, %s2368_s18   ;;  %s119_s22 = sadd.s32 1, %s2364_s17 }
   0x6   : > { %s116_s23 = ssub.s32 %s2368_s18, %s2428_s21  ;;  %p129_p0 = scmp.ne.s32.totalorder %s2364_s17, %s2360_s16 }
   0x7   : > { %p117_p1 = scmp.eq.s32.totalorder %s116_s23, 0  ;;  %p130_p2 = scmp.eq.s32.totalorder %s2424_s19, 1 }
   0x8   : > { %p135_p3 = scmp.ne.s32.totalorder %s2360_s16, %s2356_s15  ;;  %p136_p4 = scmp.eq.s32.totalorder %s1867_s20, 1 }
   0x9   : > { %s2439_s24 = scalar_select %p117_p1, %s2364_s17, %s119_s22  }
   0xa   : > { %p2441_p5 = por %p130_p2, %p129_p0  ;;  %p2445_p6 = por %p136_p4, %p135_p3 }
   0xb   : > { %p1868_p7 = scmp.ge.s32.totalorder %s2368_s18, 1  ;;  %p143_p8 = scmp.lt.s32.totalorder %s2368_s18, 3 }
   0xc   : > { %s2737_s26 = scalar_select %p2445_p6, 1, 0 }
   0xd   : > { %p2167_p9 = scmp.eq.s32.totalorder %s2424_s19, 0  ;;  %p2452_p10 = pnand %p1868_p7, %p143_p8 }
   0xe   : > { %s2370_s28 = smov [#allocation2]  }
   0xf   : > { %s155_s29 = sshll.u32 %s2370_s28, 4  ;;  %p2159_p11 = pneg %p2452_p10  ;;  %s156_s29 = int_to_ptr.vmem [resolvable:$true] %s155_s29 }
  0x10   : > { %s2289_s30 = scalar_lea.vmem %s156_s29, 16896  ;;  %p2297_p3 = scmp.lt.s32.totalorder %s156_s29, %s156_s29 }
  0x11   : > { %p2160_p12 = pnand %p2167_p9, %p2159_p11  ;;  %p2290_p0 = scmp.ne.s32.totalorder %s156_s29, %s2289_s30 }
  0x12   : > { %p2298_p4 = scmp.lt.s32.totalorder %s2289_s30, %s2289_s30 }
  0x13   : > { %p2280_p13 = pneg %p2160_p12 }
  0x14   : > { %p2299_p6 = por %p2298_p4, %p2297_p3 }
  0x15   : > { %p2292_p1 = pnand %p2290_p0, %p2280_p13 }
  0x17   : > { %p2293_p2 = pneg %p2292_p1 }
  0x19   : > { %p2300_p7 = pnand %p2299_p6, %p2293_p2 }
  0x1b   : > { %2303 = shalt.err (!%p2300_p7)
}
  0x1c   : > { %s2371_s5 = smov 256   ;;  %s2372_s6 = smov 16  }
  0x1d   : > { %2162 = dma.hbm_to_vmem [thread:$0]  (!%p2160_p12), %s2733_s2, 16896, %s156_s29, [#allocation3], %s2371_s5, %s2371_s5, %s2372_s6  }
  0x1e   : > { %192 = sbr.rel (%p2452_p10) target bundleno = 1324 (0x52c), region = 36 }
  0x23   : > { %2347 = dma.done.wait (%p2167_p9), [#allocation3], 16896  }
  0x24   : > { %2349 = vsyncadd (%p2167_p9), [#allocation3], 4294950400  ;;  %s1874_s9 = sshll.u32 %s2424_s19, 3  ;;  %vm284_vm0 = vcmask 1044480   ;;  %vm259_vm1 = vcmask 39936   ;;  %v2373_v9 = vmov 0.0  }
  0x25   : > { %p224_p8 = scmp.lt.s32.totalorder %s1874_s9, 15  ;;  %v258_v0 = vld [vmem:[#allocation2] sm:$0x1f]  ;;  %2008 = vmatprep.subr.mxu1 %v2373_v9  ;;  %vm2374_vm2 = vmmov 0   ;;  %v2375_v12 = vmov 8   ;;  %v2376_v13 = vmov 9  }
  0x26   : > { %1994 = vmatprep.subr.msk.mxu0 %vm284_vm0, %v258_v0  ;;  %2010 = vmatprep.mubr.msk.f32.mxu1 %vm2374_vm2, %v2373_v9  ;;  %vm393_vm3 = vcmask 64512   ;;  %v1105_v28 = vld [vmem:[#allocation2 + $0x108] sm:$0xff]  ;;  %v1104_v29 = vld [vmem:[#allocation2 + $0x100] sm:$0xff]  ;;  %v1103_v30 = vld [vmem:[#allocation2 + $0xf8] sm:$0xff]  ;;  %vm1511_vm4 = vcmask 1041409   ;;  %vm1513_vm5 = vcmask 1042434  }
  0x27   : > { %s2745_s9 = smov (!%p224_p8, %s1874_s9), 15  ;;  %1995 = vmatpush3.msk.msra.mxu0 %vm284_vm0, %v258_v0  ;;  %2209 = vset.pattern.permute.xlu0 %v2375_v12  ;;  %v1102_v31 = vld [vmem:[#allocation2 + $0xf0] sm:$0xff]  ;;  %v1101_v32 = vld [vmem:[#allocation2 + $0xe8] sm:$0xff]  ;;  %v1100_v33 = vld [vmem:[#allocation2 + $0xe0] sm:$0xff]  ;;  %vm1515_vm6 = vcmask 1043459   ;;  %vm1517_vm7 = vcmask 1044484  }
  0x28   : > { %s1875_s10 = sshll.u32 %s2745_s9, 3  ;;  %2028 = vmatprep.subr.mxu0 %v2373_v9  ;;  %2211 = vset.pattern.permute.xlu1 %v2375_v12  ;;  %v1099_v34 = vld [vmem:[#allocation2 + $0xd8] sm:$0xff]  ;;  %v1098_v35 = vld [vmem:[#allocation2 + $0xd0] sm:$0xff]  ;;  %v1097_v36 = vld [vmem:[#allocation2 + $0xc8] sm:$0xff]  ;;  %vm1519_vm8 = vcmask 1045509   ;;  %vm1521_vm9 = vcmask 1046534  }
  0x29   : > { %s233_s13 = scalar_lea.vmem %s2732_s1, %s1875_s10  ;;  %s227_s22 = scalar_lea.vmem %s2731_s0, %s1875_s10  ;;  %v1096_v37 = vld [vmem:[#allocation2 + $0xc0] sm:$0xff]  ;;  %v1095_v38 = vld [vmem:[#allocation2 + $0xb8] sm:$0xff]  ;;  %v1094_v39 = vld [vmem:[#allocation2 + $0xb0] sm:$0xff]  ;;  %vm1523_vm10 = vcmask 1047559  }
  0x2a   : > { %v2476_v1 = vld [vmem:[%s233_s13] sm:$0xff]  ;;  %v2478_v2 = vld [vmem:[%s233_s13 + $0x8] sm:$0xff]  ;;  %v2483_v3 = vld [vmem:[%s233_s13 + $0x10] sm:$0xff]  ;;  %s220_s10 = sand.u32 1, %s2360_s16   ;;  %s1915_s14 = sshll.u32 %s2424_s19, 7 }
  0x2b   : > { %1996 = vmatprep.mubr.msk.f32.mxu0 %vm259_vm1, %v2476_v1  ;;  %v2490_v4 = vld [vmem:[%s233_s13 + $0x18] sm:$0xff]  ;;  %v2492_v5 = vld [vmem:[%s233_s13 + $0x20] sm:$0xff]  ;;  %v2498_v6 = vld [vmem:[%s233_s13 + $0x28] sm:$0xff]  ;;  %s1873_s11 = sshll.u32 %s220_s10, 3  ;;  %s1782_s28 = scalar_lea.hbm %s2735_s4, %s1915_s14 }
  0x2c   : > { %1997 = vmatmul.mubr.msk.f32.vlgmr.msra.gmra.mxu0 %vm259_vm1, %v2478_v2  ;;  %v2500_v7 = vld [vmem:[%s233_s13 + $0x30] sm:$0xff]  ;;  %v2506_v8 = vld [vmem:[%s233_s13 + $0x38] sm:$0xff]  ;;  %v235_v10 = vld [vmem:[%s227_s22] sm:$0xff]  ;;  %s222_s20 = scalar_lea.vmem [#allocation5], %s1873_s11  ;;  %s1771_s29 = scalar_lea.sflag [#allocation4], %s220_s10 }
  0x2d   : > { %1999 = vmatprep.mubr.msk.f32.mxu0 %vm259_vm1, %v2483_v3  ;;  %v236_v11 = vld [vmem:[%s227_s22 + $0x8] sm:$0xff]  ;;  %979 = vperm.xlu0 %2209, %v235_v10   ;;  %v237_v14 = vld [vmem:[%s227_s22 + $0x10] sm:$0xff]  ;;  %v238_v15 = vld [vmem:[%s227_s22 + $0x18] sm:$0xff]  ;;  %s2377_s5 = smov [#allocation5]  }
  0x2e   : > { %983 = vperm.xlu1 %2211, %v236_v11   ;;  %v239_v16 = vld [vmem:[%s227_s22 + $0x20] sm:$0xff]  ;;  %v240_v17 = vld [vmem:[%s227_s22 + $0x28] sm:$0xff]  ;;  %v241_v18 = vld [vmem:[%s227_s22 + $0x30] sm:$0xff]  ;;  %s2308_s6 = sshll.u32 %s2377_s5, 4  ;;  %s2309_s6 = int_to_ptr.vmem [resolvable:$false] %s2308_s6 }
  0x2f   : > { %v242_v19 = vld [vmem:[%s227_s22 + $0x38] sm:$0xff]  ;;  %v1093_v40 = vld [vmem:[#allocation2 + $0xa8] sm:$0xff]  ;;  %v1092_v41 = vld [vmem:[#allocation2 + $0xa0] sm:$0xff]  ;;  %s1784_s22 = sshll.u32 %s222_s20, 4  ;;  %s2310_s19 = scalar_lea.vmem %s2309_s6, 256  ;;  %s1785_s22 = int_to_ptr.vmem [resolvable:$true] %s1784_s22 }
  0x30   : > { %2000 = vmatmul.mubr.msk.f32.gmra.mxu0 %vm259_vm1, %v2490_v4  ;;  %v1091_v42 = vld [vmem:[#allocation2 + $0x98] sm:$0xff]  ;;  %v1090_v43 = vld [vmem:[#allocation2 + $0x90] sm:$0xff]  ;;  %v1089_v44 = vld [vmem:[#allocation2 + $0x88] sm:$0xff]  ;;  %s2304_s30 = scalar_lea.vmem %s1785_s22, 128  ;;  %p2311_p11 = scmp.lt.s32.totalorder %s1785_s22, %s2309_s6 }
  0x31   : > { %2002 = vmatprep.mubr.msk.f32.mxu0 %vm259_vm1, %v2492_v5  ;;  %2210 = vset.pattern.permute.xlu0 %v2376_v13  ;;  %v1088_v45 = vld [vmem:[#allocation2 + $0x80] sm:$0xff]  ;;  %v1087_v46 = vld [vmem:[#allocation2 + $0x78] sm:$0xff]  ;;  %v1086_v47 = vld [vmem:[#allocation2 + $0x70] sm:$0xff]  ;;  %p2305_p6 = scmp.ne.s32.totalorder %s1785_s22, %s2304_s30  ;;  %p2312_p12 = scmp.lt.s32.totalorder %s2310_s19, %s2304_s30 }
  0x32   : > { %2212 = vset.pattern.permute.xlu1 %v2376_v13  ;;  %1027 = vperm.xlu0 %2210, %v235_v10   ;;  %v1085_v48 = vld [vmem:[#allocation2 + $0x68] sm:$0xff]  ;;  %v1084_v49 = vld [vmem:[#allocation2 + $0x60] sm:$0xff]  ;;  %v1083_v50 = vld [vmem:[#allocation2 + $0x58] sm:$0xff] }
  0x33   : > { %1031 = vperm.xlu1 %2212, %v236_v11   ;;  %v1082_v51 = vld [vmem:[#allocation2 + $0x50] sm:$0xff]  ;;  %v1081_v52 = vld [vmem:[#allocation2 + $0x48] sm:$0xff]  ;;  %v1080_v53 = vld [vmem:[#allocation2 + $0x40] sm:$0xff]  ;;  %p2306_p9 = pnand %p2305_p6, %p2441_p5  ;;  %p2313_p13 = por %p2312_p12, %p2311_p11 }
  0x34   : > { %2003 = vmatmul.mubr.msk.f32.gmra.mxu0 %vm259_vm1, %v2498_v6  ;;  %v1079_v54 = vld [vmem:[#allocation2 + $0x38] sm:$0xff]  ;;  %v1078_v55 = vld [vmem:[#allocation2 + $0x30] sm:$0xff]  ;;  %v1077_v56 = vld [vmem:[#allocation2 + $0x28] sm:$0xff] }
  0x35   : > { %2005 = vmatprep.mubr.msk.f32.mxu0 %vm259_vm1, %v2500_v7  ;;  %v1107_v57 = vld [vmem:[#allocation2 + $0x118] sm:$0x1f]  ;;  %v1076_v58 = vld [vmem:[#allocation2 + $0x20] sm:$0xff]  ;;  %v1106_v59 = vld [vmem:[#allocation2 + $0x110] sm:$0x1f]  ;;  %p2307_p10 = pneg %p2306_p9 }
  0x36   : > { %1035 = vperm.xlu0 %2210, %v237_v14   ;;  %v1075_v60 = vld [vmem:[#allocation2 + $0x18] sm:$0xff]  ;;  %v1074_v61 = vld [vmem:[#allocation2 + $0x10] sm:$0xff] }
  0x37   : > { %2213 = vset.pattern.permute.xlu1 %v2375_v12  ;;  %p2314_p0 = pnand %p2313_p13, %p2307_p10 }
  0x38   : > { %2006 = vmatmul.mubr.msk.f32.gmra.mxu0 %vm259_vm1, %v2506_v8  ;;  %987 = vperm.xlu1 %2213, %v237_v14  }
  0x39   : > { %2030 = vmatprep.mubr.msk.f32.mxu0 %vm2374_vm2, %v2373_v9 }
  0x3a   : > { %1039 = vperm.xlu0 %2210, %v238_v15  }
  0x3c   : > { %991 = vperm.xlu1 %2213, %v238_v15  }
  0x3e   : > { %1043 = vperm.xlu0 %2210, %v239_v16  }
  0x40   : > { %995 = vperm.xlu1 %2213, %v239_v16  }
  0x42   : > { %1047 = vperm.xlu0 %2210, %v240_v17  }
  0x44   : > { %999 = vperm.xlu1 %2213, %v240_v17  }
  0x46   : > { %1051 = vperm.xlu0 %2210, %v241_v18  }
  0x48   : > { %1003 = vperm.xlu1 %2213, %v241_v18  }
  0x4a   : > { %1055 = vperm.xlu0 %2210, %v242_v19  }
  0x4c   : > { %1007 = vperm.xlu1 %2213, %v242_v19  }
  0xa8   : > { %v980_v63 = vpop.permute.xlu0 %979 }
  0xa9   : > { %v984_v62 = vpop.permute.xlu1 %983 }
  0xae   : > { %v1032_v0 = vpop.permute.xlu1 %1031 }
  0xec   : > { %v1998_v20 = vpop.f32.mrf.mxu0 }
  0xee   : > { %v354_v21 = vpop.f32.mrf.mxu0 }
  0xef   : > { %2009 = vmatpush3.msra.mxu1 %v354_v21 }
  0xf0   : > { %v2001_v22 = vpop.f32.mrf.mxu0  ;;  %2011 = vmatmul.mubr.msk.f32.vlgmr.msra.gmra.mxu1 %vm393_vm3, %v235_v10  ;;  %2013 = vmatprep.subr.mxu1 %v2373_v9 }
  0xf1   : > { %2014 = vmatpush3.msra.mxu1 %v1998_v20  ;;  %2015 = vmatprep.mubr.msk.f32.mxu1 %vm2374_vm2, %v2373_v9 }
  0xf2   : > { %v364_v23 = vpop.f32.mrf.mxu0  ;;  %2018 = vmatprep.subr.mxu1 %v2373_v9 }
  0xf4   : > { %v2004_v24 = vpop.f32.mrf.mxu0  ;;  %2016 = vmatmul.mubr.msk.f32.vlgmr.msra.gmra.mxu1 %vm393_vm3, %v236_v11 }
  0xf5   : > { %2019 = vmatpush3.msra.mxu1 %v364_v23  ;;  %2020 = vmatprep.mubr.msk.f32.mxu1 %vm2374_vm2, %v2373_v9 }
  0xf6   : > { %v374_v25 = vpop.f32.mrf.mxu0  ;;  %2023 = vmatprep.subr.mxu1 %v2373_v9 }
  0xf7   : > { %2029 = vmatpush3.msra.mxu0 %v374_v25 }
  0xf8   : > { %v2007_v26 = vpop.f32.mrf.mxu0  ;;  %2021 = vmatmul.mubr.msk.f32.vlgmr.msra.gmra.mxu1 %vm393_vm3, %v237_v14  ;;  %2031 = vmatmul.mubr.msk.f32.vlgmr.msra.gmra.mxu0 %vm393_vm3, %v239_v16 }
  0xf9   : > { %2024 = vmatpush3.msra.mxu1 %v2001_v22  ;;  %2038 = vmatprep.subr.mxu0 %v2373_v9 }
  0xfa   : > { %v384_v27 = vpop.f32.mrf.mxu0  ;;  %2025 = vmatprep.mubr.msk.f32.mxu1 %vm2374_vm2, %v2373_v9  ;;  %2033 = vmatprep.subr.mxu1 %v2373_v9 }
  0xfb   : > { %2039 = vmatpush3.msra.mxu0 %v384_v27  ;;  %2040 = vmatprep.mubr.msk.f32.mxu0 %vm2374_vm2, %v2373_v9 }
  0xfc   : > { %2026 = vmatmul.mubr.msk.f32.vlgmr.msra.gmra.mxu1 %vm393_vm3, %v238_v15  ;;  %2041 = vmatmul.mubr.msk.f32.vlgmr.msra.gmra.mxu0 %vm393_vm3, %v241_v18 }
  0xfd   : > { %2034 = vmatpush3.msra.mxu1 %v2004_v24  ;;  %2035 = vmatprep.mubr.msk.f32.mxu1 %vm2374_vm2, %v2373_v9 }
  0xfe   : > { %2043 = vmatprep.subr.mxu1 %v2373_v9  ;;  %1178 = vmatprep.mubr.f32.mxu0 %v2373_v9 }
  0xff   : > { %1896 = vmatprep.subr.msk.mxu0 %vm284_vm0, %v1107_v57 }
 0x100   : > { %2036 = vmatmul.mubr.msk.f32.vlgmr.msra.gmra.mxu1 %vm393_vm3, %v240_v17  ;;  %1897 = vmatpush1.msk.msra.mxu0 %vm284_vm0, %v1106_v59 }
 0x101   : > { %2044 = vmatpush3.msra.mxu1 %v2007_v26  ;;  %2045 = vmatprep.mubr.msk.f32.mxu1 %vm2374_vm2, %v2373_v9 }
 0x102   : > { %1227 = vmatprep.subr.mxu1 %v1105_v28  ;;  %1898 = vmatmul.mubr.msk.f32.vlgmr.msra.gmra.mxu0 %vm259_vm1, %v2476_v1  ;;  %v1028_v1 = vpop.permute.xlu0 %1027 }
 0x103   : > { %1184 = vmatprep.mubr.f32.mxu0 %v2373_v9  ;;  %2048 = vmatprep.subr.mxu0 %v2373_v9 }
 0x104   : > { %2046 = vmatmul.mubr.msk.f32.vlgmr.msra.gmra.mxu1 %vm393_vm3, %v242_v19 }
 0x105   : > { %1228 = vmatpush1.msra.mxu1 %v1104_v29  ;;  %1291 = vmatprep.mubr.f32.mxu1 %v2373_v9 }
 0x106   : > { %1229 = vmatprep.subr.mxu1 %v1103_v30  ;;  %1899 = vmatmul.mubr.msk.f32.gmra.mxu0 %vm259_vm1, %v2478_v2  ;;  %v988_v2 = vpop.permute.xlu1 %987 }
 0x107   : > { %1230 = vmatpush1.msra.mxu1 %v1102_v31  ;;  %1190 = vmatprep.mubr.f32.mxu0 %v2373_v9 }
 0x108   : > { %1231 = vmatprep.subr.mxu1 %v1101_v32 }
 0x109   : > { %1232 = vmatpush1.msra.mxu1 %v1100_v33 }
 0x10a   : > { %1233 = vmatprep.subr.mxu1 %v1099_v34  ;;  %1900 = vmatmul.mubr.msk.f32.gmra.mxu0 %vm259_vm1, %v2483_v3  ;;  %v1036_v3 = vpop.permute.xlu0 %1035 }
 0x10b   : > { %1234 = vmatpush1.msra.mxu1 %v1098_v35  ;;  %1196 = vmatprep.mubr.f32.mxu0 %v2373_v9 }
 0x10c   : > { %1235 = vmatprep.subr.mxu1 %v1097_v36 }
 0x10d   : > { %1236 = vmatpush1.msra.mxu1 %v1096_v37 }
 0x10e   : > { %1237 = vmatprep.subr.mxu1 %v1095_v38  ;;  %1901 = vmatmul.mubr.msk.f32.gmra.mxu0 %vm259_vm1, %v2490_v4  ;;  %v2579_v4 = vld [vmem:[%s2734_s3] ss:$0 sm:$0xff]  ;;  %v1040_v11 = vpop.permute.xlu0 %1039 }
 0x10f   : > { %1238 = vmatpush1.msra.mxu1 %v1094_v39  ;;  %1202 = vmatprep.mubr.f32.mxu0 %v2373_v9  ;;  %v1011_v14 = vmul.f32 %v984_v62, %v2579_v4  ;;  %v1012_v19 = vmul.f32 %v988_v2, %v2579_v4  ;;  %v1501_v2 = vld [vmem:[#allocation2 + $0x200] sm:$0xff] }
 0x110   : > { %1239 = vmatprep.subr.mxu1 %v1093_v40 }
 0x111   : > { %1240 = vmatpush1.msra.mxu1 %v1092_v41 }
 0x112   : > { %1241 = vmatprep.subr.mxu1 %v1091_v42  ;;  %1902 = vmatmul.mubr.msk.f32.gmra.mxu0 %vm259_vm1, %v2492_v5  ;;  %v2584_v5 = vld [vmem:[%s2734_s3 + $0x1] ss:$0 sm:$0xff]  ;;  %v1044_v22 = vpop.permute.xlu0 %1043 }
 0x113   : > { %1242 = vmatpush1.msra.mxu1 %v1090_v43  ;;  %1208 = vmatprep.mubr.f32.mxu0 %v2373_v9  ;;  %v1059_v18 = vmul.f32 %v1032_v0, %v2584_v5  ;;  %v1060_v26 = vmul.f32 %v1036_v3, %v2584_v5  ;;  %v1061_v36 = vmul.f32 %v1040_v11, %v2584_v5  ;;  %v1500_v3 = vld [vmem:[#allocation2 + $0x1f0] sm:$0xff]  ;;  %v1493_v11 = vld [vmem:[#allocation2 + $0x180] sm:$0xff] }
 0x114   : > { %1243 = vmatprep.subr.mxu1 %v1089_v44 }
 0x115   : > { %1244 = vmatpush1.msra.mxu1 %v1088_v45  ;;  %v1062_v45 = vmul.f32 %v1044_v22, %v2584_v5 }
 0x116   : > { %1245 = vmatprep.subr.mxu1 %v1087_v46  ;;  %1903 = vmatmul.mubr.msk.f32.gmra.mxu0 %vm259_vm1, %v2498_v6  ;;  %v992_v6 = vpop.permute.xlu1 %991  ;;  %v1048_v37 = vpop.permute.xlu0 %1047 }
 0x117   : > { %1246 = vmatpush1.msra.mxu1 %v1086_v47  ;;  %1214 = vmatprep.mubr.f32.mxu0 %v2373_v9  ;;  %v1013_v31 = vmul.f32 %v992_v6, %v2579_v4  ;;  %v1497_v6 = vld [vmem:[#allocation2 + $0x1c0] sm:$0xff] }
 0x118   : > { %1247 = vmatprep.subr.mxu1 %v1085_v48 }
 0x119   : > { %1248 = vmatpush1.msra.mxu1 %v1084_v49 }
 0x11a   : > { %1249 = vmatprep.subr.mxu1 %v1083_v50  ;;  %1904 = vmatmul.mubr.msk.f32.gmra.mxu0 %vm259_vm1, %v2500_v7  ;;  %v1010_v7 = vmul.f32 %v980_v63, %v2579_v4  ;;  %v996_v16 = vpop.permute.xlu1 %995  ;;  %v1052_v50 = vpop.permute.xlu0 %1051 }
 0x11b   : > { %1250 = vmatpush1.msra.mxu1 %v1082_v51  ;;  %1220 = vmatprep.mubr.f32.mxu0 %v2373_v9  ;;  %v1014_v32 = vmul.f32 %v996_v16, %v2579_v4  ;;  %v1488_v16 = vld [vmem:[#allocation2 + $0x130] sm:$0xff] }
 0x11c   : > { %1251 = vmatprep.subr.mxu1 %v1081_v52  ;;  %v1063_v52 = vmul.f32 %v1048_v37, %v2584_v5 }
 0x11d   : > { %1252 = vmatpush1.msra.mxu1 %v1080_v53 }
 0x11e   : > { %1253 = vmatprep.subr.mxu1 %v1079_v54  ;;  %1905 = vmatmul.mubr.msk.f32.gmra.mxu0 %vm259_vm1, %v2506_v8  ;;  %v1058_v8 = vmul.f32 %v1028_v1, %v2584_v5  ;;  %v1000_v27 = vpop.permute.xlu1 %999  ;;  %v1502_v1 = vld [vmem:[#allocation2 + $0x210] sm:$0xff] }
 0x11f   : > { %1254 = vmatpush1.msra.mxu1 %v1078_v55  ;;  %2080 = vmatprep.mubr.msk.f32.mxu0 %vm2374_vm2, %v2373_v9  ;;  %v1015_v46 = vmul.f32 %v1000_v27, %v2579_v4  ;;  %v1604_v27 = vld [vmem:[#allocation2 + $0x2a0] sm:$0xff] }
 0x120   : > { %1255 = vmatprep.subr.mxu1 %v1077_v56  ;;  %2049 = vmatpush3.msra.mxu0 %v1502_v1 }
 0x121   : > { %1256 = vmatpush1.msra.mxu1 %v1076_v58  ;;  %v1064_v58 = vmul.f32 %v1052_v50, %v2584_v5  ;;  %2050 = vmatprep.subr.mxu0 %v2373_v9 }
 0x122   : > { %1257 = vmatprep.subr.mxu1 %v1075_v60  ;;  %v1004_v43 = vpop.permute.xlu1 %1003  ;;  %v1056_v60 = vpop.permute.xlu0 %1055  ;;  %2051 = vmatpush3.msra.mxu0 %v1501_v2 }
 0x123   : > { %1258 = vmatpush1.msra.mxu1 %v1074_v61  ;;  %v1016_v53 = vmul.f32 %v1004_v43, %v2579_v4  ;;  %v1065_v63 = vmul.f32 %v1056_v60, %v2584_v5  ;;  %2052 = vmatprep.subr.mxu0 %v2373_v9  ;;  %v1498_v5 = vld [vmem:[#allocation2 + $0x1d0] sm:$0xff] }
 0x124   : > { %2083 = vmatprep.subr.mxu1 %v2373_v9  ;;  %2053 = vmatpush3.msra.mxu0 %v1500_v3 }
 0x125   : > { %2054 = vmatprep.subr.mxu0 %v2373_v9 }
 0x126   : > { %v1008_v54 = vpop.permute.xlu1 %1007 }
 0x127   : > { %v1017_v59 = vmul.f32 %v1008_v54, %v2579_v4  ;;  %v1499_v4 = vld [vmem:[#allocation2 + $0x1e0] sm:$0xff] }
 0x128   : > { %2055 = vmatpush3.msra.mxu0 %v1499_v4 }
 0x129   : > { %2056 = vmatprep.subr.mxu0 %v2373_v9 }
 0x12a   : > { %2057 = vmatpush3.msra.mxu0 %v1498_v5 }
 0x12b   : > { %2058 = vmatprep.subr.mxu0 %v2373_v9 }
 0x12c   : > { %2059 = vmatpush3.msra.mxu0 %v1497_v6 }
 0x12d   : > { %2060 = vmatprep.subr.mxu0 %v2373_v9 }
 0x1b0   : > { %v463_v10 = vpop.f32.mrf.mxu1 }
 0x1b1   : > { %v1018_v12 = vadd.f32 %v1010_v7, %v463_v10  ;;  %v1496_v7 = vld [vmem:[#allocation2 + $0x1b0] sm:$0xff] }
 0x1b2   : > { %v2012_v13 = vpop.f32.mrf.mxu1  ;;  %2061 = vmatpush3.msra.mxu0 %v1496_v7  ;;  %v1494_v10 = vld [vmem:[#allocation2 + $0x190] sm:$0xff] }
 0x1b3   : > { %v1066_v15 = vadd.f32 %v1058_v8, %v1018_v12  ;;  %2062 = vmatprep.subr.mxu0 %v2373_v9  ;;  %v1495_v8 = vld [vmem:[#allocation2 + $0x1a0] sm:$0xff]  ;;  %v1492_v12 = vld [vmem:[#allocation2 + $0x170] sm:$0xff] }
 0x1b4   : > { %v536_v17 = vpop.f32.mrf.mxu1  ;;  %2063 = vmatpush3.msra.mxu0 %v1495_v8  ;;  %v1491_v13 = vld [vmem:[#allocation2 + $0x160] sm:$0xff] }
 0x1b5   : > { %v1019_v20 = vadd.f32 %v1011_v14, %v536_v17  ;;  %1292 = vmatmul.mubr.f32.vlgmr.msra.gmra.mxu1 %v1066_v15  ;;  %2064 = vmatprep.subr.mxu0 %v2373_v9  ;;  %v1490_v14 = vld [vmem:[#allocation2 + $0x150] sm:$0xff]  ;;  %v1489_v15 = vld [vmem:[#allocation2 + $0x140] sm:$0xff] }
 0x1b6   : > { %v2017_v21 = vpop.f32.mrf.mxu1  ;;  %1297 = vmatprep.mubr.f32.mxu1 %v2373_v9  ;;  %2065 = vmatpush3.msra.mxu0 %v1494_v10  ;;  %v1487_v17 = vld [vmem:[#allocation2 + $0x120] sm:$0xff] }
 0x1b7   : > { %v1067_v23 = vadd.f32 %v1059_v18, %v1019_v20  ;;  %2066 = vmatprep.subr.mxu0 %v2373_v9  ;;  %v1611_v18 = vld [vmem:[#allocation2 + $0x310] sm:$0xff]  ;;  %v1608_v21 = vld [vmem:[#allocation2 + $0x2e0] sm:$0xff] }
 0x1b8   : > { %v609_v24 = vpop.f32.mrf.mxu1  ;;  %v755_v25 = vpop.f32.mrf.mxu0  ;;  %2067 = vmatpush3.msra.mxu0 %v1493_v11  ;;  %2084 = vmatpush3.msra.mxu1 %v1611_v18  ;;  %v1609_v20 = vld [vmem:[#allocation2 + $0x2f0] sm:$0xff] }
 0x1b9   : > { %v1020_v28 = vadd.f32 %v1012_v19, %v609_v24  ;;  %1298 = vmatmul.mubr.f32.gmra.mxu1 %v1067_v23  ;;  %v1022_v41 = vadd.f32 %v1014_v32, %v755_v25  ;;  %2068 = vmatprep.subr.mxu0 %v2373_v9  ;;  %v1610_v19 = vld [vmem:[#allocation2 + $0x300] sm:$0xff]  ;;  %v1607_v23 = vld [vmem:[#allocation2 + $0x2d0] sm:$0xff] }
 0x1ba   : > { %v2022_v29 = vpop.f32.mrf.mxu1  ;;  %v2032_v30 = vpop.f32.mrf.mxu0  ;;  %1303 = vmatprep.mubr.f32.mxu1 %v2373_v9  ;;  %2069 = vmatpush3.msra.mxu0 %v1492_v12  ;;  %v1606_v24 = vld [vmem:[#allocation2 + $0x2c0] sm:$0xff]  ;;  %v1601_v32 = vld [vmem:[#allocation2 + $0x270] sm:$0xff] }
 0x1bb   : > { %v1068_v33 = vadd.f32 %v1060_v26, %v1020_v28  ;;  %v1070_v48 = vadd.f32 %v1062_v45, %v1022_v41  ;;  %2070 = vmatprep.subr.mxu0 %v2373_v9  ;;  %2085 = vmatprep.subr.mxu1 %v2373_v9  ;;  %v1605_v26 = vld [vmem:[#allocation2 + $0x2b0] sm:$0xff]  ;;  %v1602_v30 = vld [vmem:[#allocation2 + $0x280] sm:$0xff] }
 0x1bc   : > { %v682_v34 = vpop.f32.mrf.mxu1  ;;  %v901_v35 = vpop.f32.mrf.mxu0  ;;  %2071 = vmatpush3.msra.mxu0 %v1491_v13  ;;  %2086 = vmatpush3.msra.mxu1 %v1610_v19  ;;  %v1603_v29 = vld [vmem:[#allocation2 + $0x290] sm:$0xff]  ;;  %v1878_v41 = vld [vmem:[%s2734_s3 + $0x2] ss:$8 sm:$0x3] }
 0x1bd   : > { %v1021_v38 = vadd.f32 %v1013_v31, %v682_v34  ;;  %1304 = vmatmul.mubr.f32.gmra.mxu1 %v1068_v33  ;;  %v1024_v56 = vadd.f32 %v1016_v53, %v901_v35  ;;  %2072 = vmatprep.subr.mxu0 %v2373_v9  ;;  %v1341_v33 = vlaneseq  ;;  %v1600_v34 = vld [vmem:[#allocation2 + $0x260] sm:$0xff] }
 0x1be   : > { %v2027_v39 = vpop.f32.mrf.mxu1  ;;  %1309 = vmatprep.mubr.f32.mxu1 %v2373_v9  ;;  %v2042_v40 = vpop.f32.mrf.mxu0  ;;  %2073 = vmatpush3.msra.mxu0 %v1490_v14 }
 0x1bf   : > { %v1069_v42 = vadd.f32 %v1061_v36, %v1021_v38  ;;  %v1072_v61 = vadd.f32 %v1064_v58, %v1024_v56  ;;  %2074 = vmatprep.subr.mxu0 %v2373_v9  ;;  %2087 = vmatprep.subr.mxu1 %v2373_v9  ;;  %v1599_v36 = vld [vmem:[#allocation2 + $0x250] sm:$0xff]  ;;  %v1342_v37 = vshrl.u32 %v1341_v33, 7  ;;  %v1598_v38 = vld [vmem:[#allocation2 + $0x240] sm:$0xff] }
 0x1c0   : > { %v828_v44 = vpop.f32.mrf.mxu1  ;;  %2075 = vmatpush3.msra.mxu0 %v1489_v15  ;;  %2088 = vmatpush3.msra.mxu1 %v1609_v20 }
 0x1c1   : > { %1310 = vmatmul.mubr.f32.gmra.mxu1 %v1069_v42  ;;  %v1023_v49 = vadd.f32 %v1015_v46, %v828_v44  ;;  %2076 = vmatprep.subr.mxu0 %v2373_v9  ;;  %v1343_v40 = vsub.s32 0, %v1342_v37 }
 0x1c2   : > { %v2037_v47 = vpop.f32.mrf.mxu1  ;;  %1315 = vmatprep.mubr.f32.mxu1 %v2373_v9  ;;  %2077 = vmatpush3.msra.mxu0 %v1488_v16  ;;  %v1180_v22 = vpop.f32.mrf.mxu0 }
 0x1c3   : > { %v1071_v57 = vadd.f32 %v1063_v52, %v1023_v49  ;;  %2078 = vmatprep.subr.mxu0 %v2373_v9  ;;  %2089 = vmatprep.subr.mxu1 %v2373_v9  ;;  %v2648_v43 = vrot.slane %v1878_v41, %v1343_v40 }
 0x1c4   : > { %v974_v51 = vpop.f32.mrf.mxu1  ;;  %2079 = vmatpush3.msra.mxu0 %v1487_v17  ;;  %2090 = vmatpush3.msra.mxu1 %v1608_v21  ;;  %v2631_v25 = vpop.f32.mrf.mxu0 }
 0x1c5   : > { %1316 = vmatmul.mubr.f32.gmra.mxu1 %v1070_v48  ;;  %v1025_v62 = vadd.f32 %v1017_v59, %v974_v51  ;;  %2118 = vmatprep.subr.mxu0 %v2373_v9 }
 0x1c6   : > { %1321 = vmatprep.mubr.f32.mxu1 %v2373_v9  ;;  %v2047_v55 = vpop.f32.mrf.mxu1  ;;  %2091 = vmatprep.subr.mxu1 %v2373_v9  ;;  %v1186_v28 = vpop.f32.mrf.mxu0 }
 0x1c7   : > { %v1073_v0 = vadd.f32 %v1065_v63, %v1025_v62  ;;  %2092 = vmatpush3.msra.mxu1 %v1607_v23  ;;  %v1347_v63 = vsub.s32 1, %v1342_v37 }
 0x1c8   : > { %2093 = vmatprep.subr.mxu1 %v2373_v9  ;;  %v2637_v31 = vpop.f32.mrf.mxu0 }
 0x1c9   : > { %1322 = vmatmul.mubr.f32.gmra.mxu1 %v1071_v57  ;;  %v2655_v7 = vrot.slane %v1878_v41, %v1347_v63 }
 0x1ca   : > { %1327 = vmatprep.mubr.f32.mxu1 %v2373_v9  ;;  %2094 = vmatpush3.msra.mxu1 %v1606_v24  ;;  %v1192_v35 = vpop.f32.mrf.mxu0 }
 0x1cb   : > { %2095 = vmatprep.subr.mxu1 %v2373_v9 }
 0x1cc   : > { %2096 = vmatpush3.msra.mxu1 %v1605_v26  ;;  %v1194_v39 = vpop.f32.mrf.mxu0 }
 0x1cd   : > { %1328 = vmatmul.mubr.f32.gmra.mxu1 %v1072_v61  ;;  %2097 = vmatprep.subr.mxu1 %v2373_v9 }
 0x1ce   : > { %1333 = vmatprep.mubr.f32.mxu1 %v2373_v9  ;;  %2098 = vmatpush3.msra.mxu1 %v1604_v27  ;;  %v1198_v42 = vpop.f32.mrf.mxu0 }
 0x1cf   : > { %2099 = vmatprep.subr.mxu1 %v2373_v9 }
 0x1d0   : > { %2100 = vmatpush3.msra.mxu1 %v1603_v29  ;;  %v1200_v45 = vpop.f32.mrf.mxu0 }
 0x1d1   : > { %1334 = vmatmul.mubr.f32.gmra.mxu1 %v1073_v0  ;;  %2101 = vmatprep.subr.mxu1 %v2373_v9 }
 0x1d2   : > { %2115 = vmatprep.mubr.msk.f32.mxu1 %vm2374_vm2, %v2373_v9  ;;  %2102 = vmatpush3.msra.mxu1 %v1602_v30  ;;  %v1204_v50 = vpop.f32.mrf.mxu0 }
 0x1d3   : > { %2103 = vmatprep.subr.mxu1 %v2373_v9 }
 0x1d4   : > { %2104 = vmatpush3.msra.mxu1 %v1601_v32  ;;  %v1206_v56 = vpop.f32.mrf.mxu0 }
 0x1d5   : > { %2105 = vmatprep.subr.mxu1 %v2373_v9 }
 0x1d6   : > { %2106 = vmatpush3.msra.mxu1 %v1600_v34  ;;  %v1210_v62 = vpop.f32.mrf.mxu0 }
 0x1d7   : > { %2107 = vmatprep.subr.mxu1 %v2373_v9 }
 0x1d8   : > { %2108 = vmatpush3.msra.mxu1 %v1599_v36  ;;  %v1212_v5 = vpop.f32.mrf.mxu0 }
 0x1d9   : > { %2109 = vmatprep.subr.mxu1 %v2373_v9 }
 0x1da   : > { %2110 = vmatpush3.msra.mxu1 %v1598_v38  ;;  %v1216_v15 = vpop.f32.mrf.mxu0 }
 0x1db   : > { %2111 = vmatprep.subr.mxu1 %v2373_v9 }
 0x1dc   : > { %v1218_v26 = vpop.f32.mrf.mxu0 }
 0x1de   : > { %v1222_v36 = vpop.f32.mrf.mxu0 }
 0x275   : > { %v1293_v44 = vpop.f32.mrf.mxu1 }
 0x276   : > { %v1294_v46 = vadd.f32 %v1293_v44, %v1180_v22 }
 0x277   : > { %v1295_v47 = vpop.f32.mrf.mxu1 }
 0x278   : > { %v1351_v48 = vadd.f32 %v2648_v43, %v1294_v46  ;;  %v1296_v6 = vadd.f32 %v1295_v47, %v2631_v25 }
 0x279   : > { %v1299_v49 = vpop.f32.mrf.mxu1 }
 0x27a   : > { %v1906_v51 = vmul.f32 -1.442695, %v1351_v48  ;;  %v1300_v52 = vadd.f32 %v1299_v49, %v1186_v28  ;;  %v1352_v16 = vadd.f32 %v2655_v7, %v1296_v6 }
 0x27b   : > { %v1301_v53 = vpop.f32.mrf.mxu1 }
 0x27c   : > { %2214 = vpow2.f32 %v1906_v51  ;;  %v1353_v54 = vadd.f32 %v2648_v43, %v1300_v52  ;;  %v1302_v17 = vadd.f32 %v1301_v53, %v2637_v31 }
 0x27d   : > { %v1305_v55 = vpop.f32.mrf.mxu1 }
 0x27e   : > { %v1907_v57 = vmul.f32 -1.442695, %v1353_v54  ;;  %v1306_v58 = vadd.f32 %v1305_v55, %v1192_v35  ;;  %v1354_v28 = vadd.f32 %v2655_v7, %v1302_v17 }
 0x27f   : > { %v1307_v59 = vpop.f32.mrf.mxu1 }
 0x280   : > { %2216 = vpow2.f32 %v1907_v57  ;;  %v1355_v60 = vadd.f32 %v2648_v43, %v1306_v58  ;;  %v1308_v21 = vadd.f32 %v1307_v59, %v1194_v39 }
 0x281   : > { %v1311_v61 = vpop.f32.mrf.mxu1 }
 0x282   : > { %v1908_v0 = vmul.f32 -1.442695, %v1355_v60  ;;  %v1312_v1 = vadd.f32 %v1311_v61, %v1198_v42  ;;  %v1356_v30 = vadd.f32 %v2655_v7, %v1308_v21  ;;  %v1224_v60 = vpop.f32.mrf.mxu0 }
 0x283   : > { %v1313_v2 = vpop.f32.mrf.mxu1 }
 0x284   : > { %2218 = vpow2.f32 %v1908_v0  ;;  %v1357_v3 = vadd.f32 %v2648_v43, %v1312_v1  ;;  %v1314_v31 = vadd.f32 %v1313_v2, %v1200_v45 }
 0x285   : > { %v1317_v4 = vpop.f32.mrf.mxu1 }
 0x286   : > { %v1909_v8 = vmul.f32 -1.442695, %v1357_v3  ;;  %v1318_v10 = vadd.f32 %v1317_v4, %v1204_v50  ;;  %v1358_v40 = vadd.f32 %v2655_v7, %v1314_v31 }
 0x287   : > { %v1319_v11 = vpop.f32.mrf.mxu1 }
 0x288   : > { %2220 = vpow2.f32 %v1909_v8  ;;  %v1359_v12 = vadd.f32 %v2648_v43, %v1318_v10  ;;  %v1320_v42 = vadd.f32 %v1319_v11, %v1206_v56 }
 0x289   : > { %v2215_v13 = vpop.eup %2214  ;;  %v1323_v14 = vpop.f32.mrf.mxu1 }
 0x28a   : > { %v1910_v18 = vmul.f32 -1.442695, %v1359_v12  ;;  %v1324_v19 = vadd.f32 %v1323_v14, %v1210_v62  ;;  %v1391_v20 = vadd.f32 1.0, %v2215_v13  ;;  %v1360_v48 = vadd.f32 %v2655_v7, %v1320_v42 }
 0x28b   : > { %v1325_v22 = vpop.f32.mrf.mxu1 }
 0x28c   : > { %v1361_v23 = vadd.f32 %v2648_v43, %v1324_v19  ;;  %2222 = vpow2.f32 %v1910_v18  ;;  %v1326_v49 = vadd.f32 %v1325_v22, %v1212_v5 }
 0x28d   : > { %v2217_v24 = vpop.eup %2216  ;;  %v1329_v25 = vpop.f32.mrf.mxu1  ;;  %2224 = vtanh.f32 %v1352_v16 }
 0x28e   : > { %v1392_v27 = vadd.f32 1.0, %v2217_v24  ;;  %v1911_v29 = vmul.f32 -1.442695, %v1361_v23  ;;  %2226 = vrcp.f32 %v1391_v20  ;;  %v1330_v32 = vadd.f32 %v1329_v25, %v1216_v15 }
 0x28f   : > { %v1331_v33 = vpop.f32.mrf.mxu1  ;;  %v1362_v54 = vadd.f32 %v2655_v7, %v1326_v49 }
 0x290   : > { %2228 = vrcp.f32 %v1392_v27  ;;  %v1363_v35 = vadd.f32 %v2648_v43, %v1330_v32  ;;  %v1332_v55 = vadd.f32 %v1331_v33, %v1218_v26 }
 0x291   : > { %v2219_v34 = vpop.eup %2218  ;;  %2230 = vpow2.f32 %v1911_v29  ;;  %v1335_v37 = vpop.f32.mrf.mxu1 }
 0x292   : > { %2232 = vtanh.f32 %v1354_v28  ;;  %v1393_v38 = vadd.f32 1.0, %v2219_v34  ;;  %v1336_v39 = vadd.f32 %v1335_v37, %v1222_v36  ;;  %v1912_v41 = vmul.f32 -1.442695, %v1363_v35 }
 0x293   : > { %2234 = vtanh.f32 %v1356_v30  ;;  %v1364_v63 = vadd.f32 %v2655_v7, %v1332_v55 }
 0x294   : > { %2236 = vrcp.f32 %v1393_v38  ;;  %v1365_v44 = vadd.f32 %v2648_v43, %v1336_v39  ;;  %v1337_v43 = vpop.f32.mrf.mxu1 }
 0x295   : > { %v2221_v45 = vpop.eup %2220  ;;  %2238 = vpow2.f32 %v1912_v41  ;;  %v1338_v0 = vadd.f32 %v1337_v43, %v1224_v60 }
 0x296   : > { %v1394_v46 = vadd.f32 1.0, %v2221_v45  ;;  %v1913_v47 = vmul.f32 -1.442695, %v1365_v44  ;;  %2240 = vtanh.f32 %v1358_v40 }
 0x297   : > { %v1366_v10 = vadd.f32 %v2655_v7, %v1338_v0 }
 0x298   : > { %2242 = vrcp.f32 %v1394_v46 }
 0x299   : > { %2244 = vpow2.f32 %v1913_v47  ;;  %v2223_v50 = vpop.eup %2222 }
 0x29a   : > { %v2225_v51 = vpop.eup %2224  ;;  %v1395_v52 = vadd.f32 1.0, %v2223_v50  ;;  %2246 = vtanh.f32 %v1360_v48 }
 0x29b   : > { %v2227_v53 = vpop.eup %2226 }
 0x29c   : > { %2248 = vrcp.f32 %v1395_v52  ;;  %v1423_v62 = vmul.f32 %v2227_v53, %v2225_v51 }
 0x29d   : > { %v2229_v56 = vpop.eup %2228  ;;  %2250 = vtanh.f32 %v1362_v54 }
 0x29e   : > { %v2231_v57 = vpop.eup %2230  ;;  %v1431_v8 = vrot.slane %v1423_v62, 4 }
 0x29f   : > { %v2233_v58 = vpop.eup %2232  ;;  %v1396_v59 = vadd.f32 1.0, %v2231_v57 }
 0x2a0   : > { %v2235_v61 = vpop.eup %2234  ;;  %v1424_v2 = vmul.f32 %v2233_v58, %v2229_v56  ;;  %v1432_v17 = vadd.f32 %v1431_v8, %v1423_v62 }
 0x2a1   : > { %v2237_v1 = vpop.eup %2236  ;;  %2252 = vrcp.f32 %v1396_v59 }
 0x2a2   : > { %v2239_v3 = vpop.eup %2238  ;;  %v1425_v4 = vmul.f32 %v2237_v1, %v2235_v61  ;;  %2254 = vtanh.f32 %v1364_v63  ;;  %v1437_v12 = vrot.slane %v1424_v2, 4  ;;  %v1433_v25 = vrot.slane %v1432_v17, 2 }
 0x2a3   : > { %v1397_v5 = vadd.f32 1.0, %v2239_v3  ;;  %v2241_v6 = vpop.eup %2240 }
 0x2a4   : > { %v1443_v14 = vrot.slane %v1425_v4, 4  ;;  %v1438_v20 = vadd.f32 %v1437_v12, %v1424_v2  ;;  %v1434_v33 = vadd.f32 %v1433_v25, %v1432_v17 }
 0x2a5   : > { %v2243_v11 = vpop.eup %2242  ;;  %2256 = vrcp.f32 %v1397_v5 }
 0x2a6   : > { %v2245_v13 = vpop.eup %2244  ;;  %v1426_v15 = vmul.f32 %v2243_v11, %v2241_v6  ;;  %2258 = vtanh.f32 %v1366_v10  ;;  %v1444_v22 = vadd.f32 %v1443_v14, %v1425_v4  ;;  %v1439_v7 = vrot.slane %v1438_v20, 2 }
 0x2a7   : > { %v1398_v16 = vadd.f32 1.0, %v2245_v13  ;;  %v2247_v19 = vpop.eup %2246  ;;  %v1435_v44 = vrot.slane %v1434_v33, 1 }
 0x2a8   : > { %v1449_v18 = vrot.slane %v1426_v15, 4  ;;  %v1445_v29 = vrot.slane %v1444_v22, 2  ;;  %v1440_v35 = vadd.f32 %v1439_v7, %v1438_v20  ;;  %v1596_v7 = vld [vmem:[#allocation2 + $0x220] sm:$0xff] }
 0x2a9   : > { %2260 = vrcp.f32 %v1398_v16  ;;  %v2249_v21 = vpop.eup %2248  ;;  %v1436_v56 = vadd.f32 %v1435_v44, %v1434_v33  ;;  %v1691_v33 = vld [vmem:[#allocation2 + $0x3b0] sm:$0xff] }
 0x2aa   : > { %v1450_v23 = vadd.f32 %v1449_v18, %v1426_v15  ;;  %v1427_v24 = vmul.f32 %v2249_v21, %v2247_v19  ;;  %v2251_v26 = vpop.eup %2250  ;;  %v1446_v39 = vadd.f32 %v1445_v29, %v1444_v22  ;;  %v1441_v47 = vrot.slane %v1440_v35, 1  ;;  %v1695_v29 = vld [vmem:[#allocation2 + $0x3f0] sm:$0xff] }
 0x2ab   : > { %2262 = vtanh.f32 %v1436_v56 }
 0x2ac   : > { %v1455_v27 = vrot.slane %v1427_v24, 4  ;;  %v1451_v30 = vrot.slane %v1450_v23, 2  ;;  %v1447_v51 = vrot.slane %v1446_v39, 1  ;;  %v1442_v57 = vadd.f32 %v1441_v47, %v1440_v35  ;;  %v1689_v35 = vld [vmem:[#allocation2 + $0x390] sm:$0xff]  ;;  %v1682_v47 = vld [vmem:[#allocation2 + $0x320] sm:$0xff] }
 0x2ae   : > { %v2253_v28 = vpop.eup %2252  ;;  %v1456_v31 = vadd.f32 %v1455_v27, %v1427_v24  ;;  %v1452_v40 = vadd.f32 %v1451_v30, %v1450_v23  ;;  %v1448_v61 = vadd.f32 %v1447_v51, %v1446_v39  ;;  %2264 = vtanh.f32 %v1442_v57  ;;  %v1697_v27 = vld [vmem:[#allocation2 + $0x410] sm:$0xff]  ;;  %v1694_v30 = vld [vmem:[#allocation2 + $0x3e0] sm:$0xff] }
 0x2af   : > { %v1428_v32 = vmul.f32 %v2253_v28, %v2251_v26  ;;  %v2255_v34 = vpop.eup %2254  ;;  %v1597_v26 = vld [vmem:[#allocation2 + $0x230] sm:$0xff]  ;;  %v1696_v28 = vld [vmem:[#allocation2 + $0x400] sm:$0xff] }
 0x2b0   : > { %v1457_v36 = vrot.slane %v1456_v31, 2  ;;  %v1453_v52 = vrot.slane %v1452_v40, 1  ;;  %2266 = vtanh.f32 %v1448_v61  ;;  %2112 = vmatpush3.msra.mxu1 %v1597_v26  ;;  %v1685_v39 = vld [vmem:[#allocation2 + $0x350] sm:$0xff] }
 0x2b1   : > { %v1461_v37 = vrot.slane %v1428_v32, 4  ;;  %2113 = vmatprep.subr.mxu1 %v2373_v9 }
 0x2b2   : > { %v2257_v38 = vpop.eup %2256  ;;  %v1458_v45 = vadd.f32 %v1457_v36, %v1456_v31  ;;  %v1454_v62 = vadd.f32 %v1453_v52, %v1452_v40  ;;  %2114 = vmatpush3.msra.mxu1 %v1596_v7  ;;  %v1693_v31 = vld [vmem:[#allocation2 + $0x3d0] sm:$0xff]  ;;  %v1688_v36 = vld [vmem:[#allocation2 + $0x380] sm:$0xff] }
 0x2b3   : > { %v1462_v41 = vadd.f32 %v1461_v37, %v1428_v32  ;;  %v1429_v42 = vmul.f32 %v2257_v38, %v2255_v34  ;;  %v2259_v46 = vpop.eup %2258  ;;  %v1692_v32 = vld [vmem:[#allocation2 + $0x3c0] sm:$0xff]  ;;  %v1687_v37 = vld [vmem:[#allocation2 + $0x370] sm:$0xff] }
 0x2b4   : > { %v1459_v43 = vrot.slane %v1458_v45, 1  ;;  %2268 = vtanh.f32 %v1454_v62  ;;  %v1690_v34 = vld [vmem:[#allocation2 + $0x3a0] sm:$0xff] }
 0x2b5   : > { %v1463_v48 = vrot.slane %v1462_v41, 2  ;;  %v1467_v49 = vrot.slane %v1429_v42, 4  ;;  %v1686_v38 = vld [vmem:[#allocation2 + $0x360] sm:$0xff] }
 0x2b6   : > { %v2261_v50 = vpop.eup %2260  ;;  %v1460_v1 = vadd.f32 %v1459_v43, %v1458_v45  ;;  %v1684_v40 = vld [vmem:[#allocation2 + $0x340] sm:$0xff] }
 0x2b7   : > { %v1464_v53 = vadd.f32 %v1463_v48, %v1462_v41  ;;  %v1468_v54 = vadd.f32 %v1467_v49, %v1429_v42  ;;  %v1430_v55 = vmul.f32 %v2261_v50, %v2259_v46  ;;  %v255_v41 = vld [vmem:[%s2734_s3 + $0x3] ss:$0 sm:$0xff]  ;;  %v1683_v46 = vld [vmem:[#allocation2 + $0x330] sm:$0xff]  ;;  %v256_v48 = vld [vmem:[%s2734_s3 + $0x4] ss:$0 sm:$0xff] }
 0x2b8   : > { %2270 = vtanh.f32 %v1460_v1  ;;  %v2263_v11 = vpop.eup %2262  ;;  %v257_v52 = vld [vmem:[%s2734_s3 + $0x5] ss:$0 sm:$0xff] }
 0x2b9   : > { %v1465_v58 = vrot.slane %v1464_v53, 1  ;;  %v1469_v59 = vrot.slane %v1468_v54, 2  ;;  %v1473_v60 = vrot.slane %v1430_v55, 4 }
 0x2bb   : > { %v1470_v63 = vadd.f32 %v1469_v59, %v1468_v54  ;;  %v1474_v0 = vadd.f32 %v1473_v60, %v1430_v55  ;;  %v1466_v2 = vadd.f32 %v1465_v58, %v1464_v53  ;;  %v2265_v12 = vpop.eup %2264 }
 0x2bc   : > { %v1512_v16 = vsel %vm1511_vm4, %v2265_v12, %v2263_v11 }
 0x2bd   : > { %v1471_v3 = vrot.slane %v1470_v63, 1  ;;  %v1475_v4 = vrot.slane %v1474_v0, 2  ;;  %2272 = vtanh.f32 %v1466_v2  ;;  %v2267_v13 = vpop.eup %2266 }
 0x2be   : > { %v1514_v18 = vsel %vm1513_vm5, %v2267_v13, %v1512_v16 }
 0x2bf   : > { %v1472_v5 = vadd.f32 %v1471_v3, %v1470_v63  ;;  %v1476_v6 = vadd.f32 %v1475_v4, %v1474_v0 }
 0x2c1   : > { %v1477_v8 = vrot.slane %v1476_v6, 1  ;;  %2274 = vtanh.f32 %v1472_v5  ;;  %v2269_v14 = vpop.eup %2268 }
 0x2c2   : > { %v1516_v20 = vsel %vm1515_vm6, %v2269_v14, %v1514_v18 }
 0x2c3   : > { %v1478_v10 = vadd.f32 %v1477_v8, %v1476_v6 }
 0x2c5   : > { %2276 = vtanh.f32 %v1478_v10  ;;  %v2271_v15 = vpop.eup %2270 }
 0x2c6   : > { %v1518_v21 = vsel %vm1517_vm7, %v2271_v15, %v1516_v20 }
 0x2ca   : > { %v2273_v17 = vpop.eup %2272 }
 0x2cb   : > { %v1520_v22 = vsel %vm1519_vm8, %v2273_v17, %v1518_v21 }
 0x2ce   : > { %v2275_v19 = vpop.eup %2274 }
 0x2cf   : > { %v1522_v24 = vsel %vm1521_vm9, %v2275_v19, %v1520_v22 }
 0x2d2   : > { %v2277_v23 = vpop.eup %2276 }
 0x2d3   : > { %v1524_v25 = vsel %vm1523_vm10, %v2277_v23, %v1522_v24 }
 0x2d4   : > { %2081 = vmatmul.mubr.f32.vlgmr.msra.gmra.mxu0 %v1524_v25 }
 0x2d5   : > { %2150 = vmatprep.mubr.msk.f32.mxu0 %vm2374_vm2, %v2373_v9  ;;  %2119 = vmatpush3.msra.mxu0 %v1697_v27 }
 0x2d6   : > { %2120 = vmatprep.subr.mxu0 %v2373_v9 }
 0x2d7   : > { %2121 = vmatpush3.msra.mxu0 %v1696_v28 }
 0x2d8   : > { %2122 = vmatprep.subr.mxu0 %v2373_v9 }
 0x2d9   : > { %2123 = vmatpush3.msra.mxu0 %v1695_v29 }
 0x2da   : > { %2124 = vmatprep.subr.mxu0 %v2373_v9 }
 0x2db   : > { %2125 = vmatpush3.msra.mxu0 %v1694_v30 }
 0x2dc   : > { %2126 = vmatprep.subr.mxu0 %v2373_v9 }
 0x2dd   : > { %2127 = vmatpush3.msra.mxu0 %v1693_v31 }
 0x2de   : > { %2128 = vmatprep.subr.mxu0 %v2373_v9 }
 0x2df   : > { %2129 = vmatpush3.msra.mxu0 %v1692_v32 }
 0x2e0   : > { %2130 = vmatprep.subr.mxu0 %v2373_v9 }
 0x2e1   : > { %2131 = vmatpush3.msra.mxu0 %v1691_v33 }
 0x2e2   : > { %2132 = vmatprep.subr.mxu0 %v2373_v9 }
 0x2e3   : > { %2133 = vmatpush3.msra.mxu0 %v1690_v34 }
 0x2e4   : > { %2134 = vmatprep.subr.mxu0 %v2373_v9 }
 0x2e5   : > { %2135 = vmatpush3.msra.mxu0 %v1689_v35 }
 0x2e6   : > { %2136 = vmatprep.subr.mxu0 %v2373_v9 }
 0x2e7   : > { %2137 = vmatpush3.msra.mxu0 %v1688_v36 }
 0x2e8   : > { %2138 = vmatprep.subr.mxu0 %v2373_v9 }
 0x2e9   : > { %2139 = vmatpush3.msra.mxu0 %v1687_v37 }
 0x2ea   : > { %2140 = vmatprep.subr.mxu0 %v2373_v9 }
 0x2eb   : > { %2141 = vmatpush3.msra.mxu0 %v1686_v38 }
 0x2ec   : > { %2142 = vmatprep.subr.mxu0 %v2373_v9 }
 0x2ed   : > { %2143 = vmatpush3.msra.mxu0 %v1685_v39 }
 0x2ee   : > { %2144 = vmatprep.subr.mxu0 %v2373_v9 }
 0x2ef   : > { %2145 = vmatpush3.msra.mxu0 %v1684_v40 }
 0x2f0   : > { %2146 = vmatprep.subr.mxu0 %v2373_v9 }
 0x2f1   : > { %2147 = vmatpush3.msra.mxu0 %v1683_v46 }
 0x2f2   : > { %2148 = vmatprep.subr.mxu0 %v2373_v9 }
 0x2f3   : > { %2149 = vmatpush3.msra.mxu0 %v1682_v47 }
 0x394   : > { %v1592_v42 = vpop.f32.mrf.mxu0 }
 0x395   : > { %v1593_v44 = vadd.f32 %v1592_v42, %v255_v41 }
 0x396   : > { %v2082_v45 = vpop.f32.mrf.mxu0 }
 0x397   : > { %2116 = vmatmul.mubr.f32.vlgmr.msra.gmra.mxu1 %v1593_v44 }
 0x457   : > { %v1678_v49 = vpop.f32.mrf.mxu1 }
 0x458   : > { %v1679_v50 = vadd.f32 %v1678_v49, %v256_v48 }
 0x459   : > { %v2117_v51 = vpop.f32.mrf.mxu1 }
 0x45a   : > { %2151 = vmatmul.mubr.f32.vlgmr.msra.gmra.mxu0 %v1679_v50 }
 0x51a   : > { %v1764_v53 = vpop.f32.mrf.mxu0 }
 0x51b   : > { %v1765_v9 = vadd.f32 %v1764_v53, %v257_v52 }
 0x51c   : > { %v2152_v54 = vpop.f32.mrf.mxu0 }
 0x51d   : > { %v1768_v55 = vadd.f32 %v1765_v9, %v1679_v50 }
 0x51f   : > { %1769 = vst [vmem:[%s222_s20] sm:$0xff] %v1768_v55 }
 0x520   : > { %2317 = shalt.err (!%p2314_p0)
}
 0x521   : > { %s2318_s7 = scalar_lea.hbm %s1782_s28, 128  ;;  %s2322_s10 = scalar_lea.hbm %s2735_s4, 256 }
 0x522   : > { %p2319_p1 = scmp.ne.s32.totalorder %s1782_s28, %s2318_s7  ;;  %p2323_p4 = scmp.lt.s32.totalorder %s1782_s28, %s2735_s4 }
 0x523   : > { %p2324_p7 = scmp.lt.s32.totalorder %s2322_s10, %s2318_s7 }
 0x524   : > { %p2320_p2 = pnand %p2319_p1, %p2441_p5 }
 0x525   : > { %p2325_p8 = por %p2324_p7, %p2323_p4 }
 0x526   : > { %p2321_p3 = pneg %p2320_p2 }
 0x528   : > { %p2326_p6 = pnand %p2325_p8, %p2321_p3 }
 0x52a   : > { %2329 = shalt.err (!%p2326_p6)
}
 0x52b   : > { %2157 = dma.vmem_to_hbm [thread:$0]  (%p2441_p5), %s1785_s22, 128, %s1782_s28, %s1771_s29  }
 0x52c PF: > { %p2169_p9 = scmp.ge.s32.totalorder %s2368_s18, 2  ;;  %s1796_s13 = sand.u32 1, %s2356_s15  }
 0x52d   : > { %p2739_p10 = scmp.ne.s32.totalorder %s2737_s26, 0  ;;  %s1797_s14 = scalar_lea.sflag [#allocation4], %s1796_s13 }
 0x52f   : > { %p2164_p11 = pnand %p2169_p9, %p2739_p10 }
 0x531   : > { %p2165_p12 = pneg %p2164_p11 }
 0x533   : > { %2351 = dma.done.wait (%p2165_p12), %s1797_s14, 128  }
 0x534   : > { %2353 = vsyncadd (%p2165_p12), %s1797_s14, 4294967168  ;;  %p15_p13 = scmp.ge.s32.totalorder %s2428_s21, 4   ;;  %s2740_s15 = smov %s2360_s16 }
 0x535   : > { %s2741_s16 = smov %s2364_s17  ;;  %s2742_s17 = smov %s2439_s24 }
 0x536   : > { %s2743_s18 = smov %s2428_s21  ;;  %17 = sbr.rel (!%p15_p13) target bundleno = 4 (0x4), region = 80 }
 0x53b   :  { %1802 = vsyncpa [#allocation3], 1 }
 0x53c   :  { %1804 = vsyncpa [#allocation3 + $0x1], 1 }
 0x53d   :  { %1805 = vsyncpa [#allocation4], 1 }
 0x53e   :  { %1807 = vsyncpa [#allocation4 + $0x1], 1 }

</bundles_post_ra>
